<compile_context>
chip_gen: v7x
topology: tpu7x:2x2x1
jax: 0.10.0
libtpu: 0.0.40
codegen_flags: <defaults>
</compile_context>

<pallas_src>
import functools

import jax
import jax.numpy as jnp
from jax.experimental import pallas as pl
from jax.experimental.pallas import tpu as pltpu

_LANE = 128
_SUBLANE = 8


def _round_up(n, m):
    return ((n + m - 1) // m) * m


def adversarial_net_kernel(x_ref, w1_ref, b1_ref, w2_ref, b2_ref,
                           w3_ref, b3_ref, out_ref):
    # Cast activations to bf16 for the MXU; accumulate in f32.
    x = x_ref[...].astype(jnp.bfloat16)

    # Layer 1: Linear + ReLU   (dropout1 = identity at inference)
    h1 = jnp.dot(x, w1_ref[...], preferred_element_type=jnp.float32)
    h1 = jnp.maximum(h1 + b1_ref[...], 0.0).astype(jnp.bfloat16)

    # Layer 2: Linear + ReLU   (dropout2 = identity at inference)
    h2 = jnp.dot(h1, w2_ref[...], preferred_element_type=jnp.float32)
    h2 = jnp.maximum(h2 + b2_ref[...], 0.0).astype(jnp.bfloat16)

    # Layer 3: Linear (N padded to 128 for a full MXU tile + lane-dense store)
    y = jnp.dot(h2, w3_ref[...], preferred_element_type=jnp.float32)
    y = y + b3_ref[...]
    out_ref[...] = jax.nn.sigmoid(y)          # f32 epilogue, lane-dense store


@functools.partial(jax.jit, static_argnames=("block_b",))
def adversarial_network(x, w1, b1, w2, b2, w3, b3, *, block_b=512):
    """x: [B, in_feature] -> [B, 1].

    Weights stored as [in, out] (transpose of PyTorch's nn.Linear layout).
    All feature dims are zero-padded to 128-lane multiples, batch to the tile
    size; the padded (B_pad, 128) output is sliced back to (B, 1).
    """
    B, in_f = x.shape
    hid = w1.shape[1]

    in_p = _round_up(in_f, _LANE)
    hid_p = _round_up(hid, _LANE)
    out_p = _LANE                                   # final dim 1 -> 128 lanes

    tb = min(block_b, _round_up(B, _SUBLANE))       # batch tile
    b_p = _round_up(B, tb)
    grid = b_p // tb

    f32 = jnp.float32
    bf16 = jnp.bfloat16

    # Zero padding is exact for this MLP (zero inputs/weights/biases feed
    # zeros through matmul+relu); bf16 weight cast done once here so the
    # VMEM-resident copies are half-size.
    xp = jnp.pad(x.astype(f32), ((0, b_p - B), (0, in_p - in_f)))
    w1p = jnp.pad(w1, ((0, in_p - in_f), (0, hid_p - hid))).astype(bf16)
    b1p = jnp.pad(b1.reshape(1, -1).astype(f32), ((0, 0), (0, hid_p - hid)))
    w2p = jnp.pad(w2, ((0, hid_p - hid), (0, hid_p - hid))).astype(bf16)
    b2p = jnp.pad(b2.reshape(1, -1).astype(f32), ((0, 0), (0, hid_p - hid)))
    w3p = jnp.pad(w3, ((0, hid_p - hid), (0, out_p - 1))).astype(bf16)
    b3p = jnp.pad(b3.reshape(1, -1).astype(f32), ((0, 0), (0, out_p - 1)))

    const2d = lambda i: (0, 0)                      # VMEM-resident params

    out = pl.pallas_call(
        adversarial_net_kernel,
        out_shape=jax.ShapeDtypeStruct((b_p, out_p), f32),
        grid_spec=pltpu.PrefetchScalarGridSpec(
            num_scalar_prefetch=0,
            grid=(grid,),
            in_specs=[
                pl.BlockSpec((tb, in_p), lambda i: (i, 0)),     # x: tiled on B
                pl.BlockSpec((in_p, hid_p), const2d),           # w1
                pl.BlockSpec((1, hid_p), const2d),              # b1
                pl.BlockSpec((hid_p, hid_p), const2d),          # w2
                pl.BlockSpec((1, hid_p), const2d),              # b2
                pl.BlockSpec((hid_p, out_p), const2d),          # w3 (padded N)
                pl.BlockSpec((1, out_p), const2d),              # b3 (padded N)
            ],
            out_specs=pl.BlockSpec((tb, out_p), lambda i: (i, 0)),
        ),
        compiler_params=pltpu.CompilerParams(
            dimension_semantics=("parallel",),       # shard batch over TCs (v7x)
            vmem_limit_bytes=48 * 1024 * 1024,
        ),
    )(xp, w1p, b1p, w2p, b2p, w3p, b3p)

    return out[:B, :1]


def init_params(key, in_feature, hidden_size):
    """Deterministic synthetic init (mirrors nn.Linear shapes; stored as
    [in, out] instead of PyTorch's [out, in])."""
    k1, k2, k3 = jax.random.split(key, 3)
    w1 = jax.random.normal(k1, (in_feature, hidden_size), jnp.float32) * 0.02
    b1 = jnp.zeros((hidden_size,), jnp.float32)
    w2 = jax.random.normal(k2, (hidden_size, hidden_size), jnp.float32) * 0.02
    b2 = jnp.zeros((hidden_size,), jnp.float32)
    w3 = jax.random.normal(k3, (hidden_size, 1), jnp.float32) * 0.3
    b3 = jnp.zeros((1,), jnp.float32)
    return w1, b1, w2, b2, w3, b3


if __name__ == "__main__":
    key = jax.random.PRNGKey(0)
    kx, kp = jax.random.split(key)

    # Small demo shapes (deliberately not 128-aligned to exercise the padding
    # path). Realistic AdversarialNetwork sizes (in~2048, hidden~1024,
    # B in the hundreds) are where the tiling/bf16 changes actually pay off.
    B, in_feature, hidden_size = 16, 64, 32
    x = jax.random.normal(kx, (B, in_feature), jnp.float32)
    params = init_params(kp, in_feature, hidden_size)

    y = adversarial_network(x, *params)
    jax.block_until_ready(y)

    # Reference check against plain f32 JAX (bf16 MXU operands -> loose atol).
    w1, b1, w2, b2, w3, b3 = params
    h1 = jnp.maximum(x @ w1 + b1, 0.0)
    h2 = jnp.maximum(h1 @ w2 + b2, 0.0)
    y_ref = jax.nn.sigmoid(h2 @ w3 + b3)
    assert y.shape == (B, 1), y.shape
    assert jnp.allclose(y, y_ref, atol=2e-2), "mismatch vs reference"

    print("KERNEL_OK")
</pallas_src>

<mosaic_0001>
module attributes {stable_mosaic.version = 11 : i64} {
  func.func @adversarial_net_kernel(%arg0: i32, %arg1: memref<16x128xf32, #tpu.memory_space<vmem>>, %arg2: memref<128x128xbf16, #tpu.memory_space<vmem>>, %arg3: memref<1x128xf32, #tpu.memory_space<vmem>>, %arg4: memref<128x128xbf16, #tpu.memory_space<vmem>>, %arg5: memref<1x128xf32, #tpu.memory_space<vmem>>, %arg6: memref<128x128xbf16, #tpu.memory_space<vmem>>, %arg7: memref<1x128xf32, #tpu.memory_space<vmem>>, %arg8: memref<16x128xf32, #tpu.memory_space<vmem>>) attributes {dimension_semantics = [#tpu.dimension_semantics<parallel>], iteration_bounds = array<i64: 1>, scalar_prefetch = 0 : i64, scratch_operands = 0 : i64, tpu.core_type = #tpu.core_type<tc>, window_params = [{transform_indices = @transform_0, window_bounds = array<i64: 16, 128>}, {pipeline_mode = #tpu.pipeline_mode<synchronous>, transform_indices = @transform_1, window_bounds = array<i64: 128, 128>}, {pipeline_mode = #tpu.pipeline_mode<synchronous>, transform_indices = @transform_2, window_bounds = array<i64: 1, 128>}, {pipeline_mode = #tpu.pipeline_mode<synchronous>, transform_indices = @transform_3, window_bounds = array<i64: 128, 128>}, {pipeline_mode = #tpu.pipeline_mode<synchronous>, transform_indices = @transform_4, window_bounds = array<i64: 1, 128>}, {pipeline_mode = #tpu.pipeline_mode<synchronous>, transform_indices = @transform_5, window_bounds = array<i64: 128, 128>}, {pipeline_mode = #tpu.pipeline_mode<synchronous>, transform_indices = @transform_6, window_bounds = array<i64: 1, 128>}, {transform_indices = @transform_7, window_bounds = array<i64: 16, 128>}]} {
    %c0 = arith.constant 0 : index
    %c0_0 = arith.constant 0 : index
    %0 = vector.load %arg1[%c0, %c0_0] : memref<16x128xf32, #tpu.memory_space<vmem>>, vector<16x128xf32>
    %1 = arith.truncf %0 : vector<16x128xf32> to vector<16x128xbf16>
    %c0_1 = arith.constant 0 : index
    %c0_2 = arith.constant 0 : index
    %2 = vector.load %arg2[%c0_1, %c0_2] : memref<128x128xbf16, #tpu.memory_space<vmem>>, vector<128x128xbf16>
    %cst = arith.constant dense<0.000000e+00> : vector<16x128xf32>
    %3 = tpu.matmul %1, %2, %cst {dimension_numbers = #tpu.dot_dimension_numbers<[1], [0], [0], [1], [0, 0, 1, 1], [], []>} : vector<16x128xbf16>, vector<128x128xbf16>, vector<16x128xf32> -> vector<16x128xf32>
    %c0_3 = arith.constant 0 : index
    %c0_4 = arith.constant 0 : index
    %4 = vector.load %arg3[%c0_3, %c0_4] : memref<1x128xf32, #tpu.memory_space<vmem>>, vector<1x128xf32>
    %5 = vector.broadcast %4 : vector<1x128xf32> to vector<16x128xf32>
    %6 = arith.addf %3, %5 : vector<16x128xf32>
    %cst_5 = arith.constant 0.000000e+00 : f32
    %7 = vector.broadcast %cst_5 : f32 to vector<16x128xf32>
    %8 = arith.maximumf %6, %7 : vector<16x128xf32>
    %9 = arith.truncf %8 : vector<16x128xf32> to vector<16x128xbf16>
    %c0_6 = arith.constant 0 : index
    %c0_7 = arith.constant 0 : index
    %10 = vector.load %arg4[%c0_6, %c0_7] : memref<128x128xbf16, #tpu.memory_space<vmem>>, vector<128x128xbf16>
    %cst_8 = arith.constant dense<0.000000e+00> : vector<16x128xf32>
    %11 = tpu.matmul %9, %10, %cst_8 {dimension_numbers = #tpu.dot_dimension_numbers<[1], [0], [0], [1], [0, 0, 1, 1], [], []>} : vector<16x128xbf16>, vector<128x128xbf16>, vector<16x128xf32> -> vector<16x128xf32>
    %c0_9 = arith.constant 0 : index
    %c0_10 = arith.constant 0 : index
    %12 = vector.load %arg5[%c0_9, %c0_10] : memref<1x128xf32, #tpu.memory_space<vmem>>, vector<1x128xf32>
    %13 = vector.broadcast %12 : vector<1x128xf32> to vector<16x128xf32>
    %14 = arith.addf %11, %13 : vector<16x128xf32>
    %cst_11 = arith.constant 0.000000e+00 : f32
    %15 = vector.broadcast %cst_11 : f32 to vector<16x128xf32>
    %16 = arith.maximumf %14, %15 : vector<16x128xf32>
    %17 = arith.truncf %16 : vector<16x128xf32> to vector<16x128xbf16>
    %c0_12 = arith.constant 0 : index
    %c0_13 = arith.constant 0 : index
    %18 = vector.load %arg6[%c0_12, %c0_13] : memref<128x128xbf16, #tpu.memory_space<vmem>>, vector<128x128xbf16>
    %cst_14 = arith.constant dense<0.000000e+00> : vector<16x128xf32>
    %19 = tpu.matmul %17, %18, %cst_14 {dimension_numbers = #tpu.dot_dimension_numbers<[1], [0], [0], [1], [0, 0, 1, 1], [], []>} : vector<16x128xbf16>, vector<128x128xbf16>, vector<16x128xf32> -> vector<16x128xf32>
    %c0_15 = arith.constant 0 : index
    %c0_16 = arith.constant 0 : index
    %20 = vector.load %arg7[%c0_15, %c0_16] : memref<1x128xf32, #tpu.memory_space<vmem>>, vector<1x128xf32>
    %21 = vector.broadcast %20 : vector<1x128xf32> to vector<16x128xf32>
    %22 = arith.addf %19, %21 : vector<16x128xf32>
    %23 = arith.negf %22 : vector<16x128xf32>
    %24 = math.exp %23 : vector<16x128xf32>
    %cst_17 = arith.constant 1.000000e+00 : f32
    %25 = vector.broadcast %cst_17 : f32 to vector<16x128xf32>
    %26 = arith.addf %25, %24 : vector<16x128xf32>
    %27 = arith.divf %25, %26 : vector<16x128xf32>
    %c0_18 = arith.constant 0 : index
    %c0_19 = arith.constant 0 : index
    %28 = vector.load %arg8[%c0_18, %c0_19] : memref<16x128xf32, #tpu.memory_space<vmem>>, vector<16x128xf32>
    tpu.vector_store %arg8[%c0_18, %c0_19], %27 {strides = array<i32>} : memref<16x128xf32, #tpu.memory_space<vmem>>, vector<16x128xf32>,
    return
  }
  func.func @transform_0(%arg0: i32) -> (i32, i32) {
    %c0_i32 = arith.constant 0 : i32
    %c0_i32_0 = arith.constant 0 : i32
    return %arg0, %c0_i32 : i32, i32
  }
  func.func @transform_1(%arg0: i32) -> (i32, i32) {
    %c0_i32 = arith.constant 0 : i32
    %c0_i32_0 = arith.constant 0 : i32
    %c0_i32_1 = arith.constant 0 : i32
    return %c0_i32, %c0_i32_0 : i32, i32
  }
  func.func @transform_2(%arg0: i32) -> (i32, i32) {
    %c0_i32 = arith.constant 0 : i32
    %c0_i32_0 = arith.constant 0 : i32
    %c0_i32_1 = arith.constant 0 : i32
    return %c0_i32, %c0_i32_0 : i32, i32
  }
  func.func @transform_3(%arg0: i32) -> (i32, i32) {
    %c0_i32 = arith.constant 0 : i32
    %c0_i32_0 = arith.constant 0 : i32
    %c0_i32_1 = arith.constant 0 : i32
    return %c0_i32, %c0_i32_0 : i32, i32
  }
  func.func @transform_4(%arg0: i32) -> (i32, i32) {
    %c0_i32 = arith.constant 0 : i32
    %c0_i32_0 = arith.constant 0 : i32
    %c0_i32_1 = arith.constant 0 : i32
    return %c0_i32, %c0_i32_0 : i32, i32
  }
  func.func @transform_5(%arg0: i32) -> (i32, i32) {
    %c0_i32 = arith.constant 0 : i32
    %c0_i32_0 = arith.constant 0 : i32
    %c0_i32_1 = arith.constant 0 : i32
    return %c0_i32, %c0_i32_0 : i32, i32
  }
  func.func @transform_6(%arg0: i32) -> (i32, i32) {
    %c0_i32 = arith.constant 0 : i32
    %c0_i32_0 = arith.constant 0 : i32
    %c0_i32_1 = arith.constant 0 : i32
    return %c0_i32, %c0_i32_0 : i32, i32
  }
  func.func @transform_7(%arg0: i32) -> (i32, i32) {
    %c0_i32 = arith.constant 0 : i32
    %c0_i32_0 = arith.constant 0 : i32
    return %arg0, %c0_i32 : i32, i32
  }
}

</mosaic_0001>

<bundles_post_ra>
// kernel: adversarial_network.1
= control target key start
LH: loop header
LB: loop body
LE: loop exit
PB: predicated region body
PF: predicated region fallthrough
CT: control target
= control target key end

     0   :  { %v540_v0 = vmov 0.0   ;;  %vm541_vm0 = vmmov 0   ;;  %s705_s1 = inlined_call_operand.vmem [shape: bf16[128,128], index: 1, kind: input, shape index: {}]   ;;  %s706_s3 = inlined_call_operand.vmem [shape: bf16[128,128], index: 3, kind: input, shape index: {}]   ;;  %s707_s0 = inlined_call_operand.vmem [shape: f32[16,128], index: 0, kind: input, shape index: {}]   ;;  %s708_s5 = inlined_call_operand.vmem [shape: bf16[128,128], index: 5, kind: input, shape index: {}]   ;;  %s709_s2 = inlined_call_operand.vmem [shape: f32[1,128], index: 2, kind: input, shape index: {}]   ;;  %s710_s4 = inlined_call_operand.vmem [shape: f32[1,128], index: 4, kind: input, shape index: {}]   ;;  %s711_s6 = inlined_call_operand.vmem [shape: f32[1,128], index: 6, kind: input, shape index: {}]   ;;  %s712_s7 = inlined_call_operand.vmem [shape: f32[16,128], index: 7, kind: output, shape index: {}]  }
   0x1   :  { %446 = vmatprep.subr.bf16.mxu0 %v540_v0  ;;  %v508_v1 = vld [vmem:[%s705_s1] sm:$0xff]   ;;  %462 = vmatprep.mubr.msk.bf16.mxu0 %vm541_vm0, %v540_v0  ;;  %v509_v2 = vld [vmem:[%s705_s1 + $0x8] sm:$0xff]   ;;  %v510_v3 = vld [vmem:[%s705_s1 + $0x10] sm:$0xff]  }
   0x2   :  { %466 = vmatprep.subr.bf16.mxu1 %v540_v0  ;;  %482 = vmatprep.mubr.msk.bf16.mxu1 %vm541_vm0, %v540_v0  ;;  %v516_v4 = vld [vmem:[%s706_s3] sm:$0xff]   ;;  %v511_v5 = vld [vmem:[%s705_s1 + $0x18] sm:$0xff]   ;;  %v517_v6 = vld [vmem:[%s706_s3 + $0x8] sm:$0xff]  }
   0x3   :  { %447 = vmatpush3.bf16.msra.mxu0 %v508_v1  ;;  %467 = vmatpush3.bf16.msra.mxu1 %v516_v4  ;;  %v512_v7 = vld [vmem:[%s705_s1 + $0x20] sm:$0xff]   ;;  %v518_v8 = vld [vmem:[%s706_s3 + $0x10] sm:$0xff]   ;;  %v513_v9 = vld [vmem:[%s705_s1 + $0x28] sm:$0xff]  }
   0x4   :  { %448 = vmatprep.subr.bf16.mxu0 %v540_v0  ;;  %468 = vmatprep.subr.bf16.mxu1 %v540_v0  ;;  %v519_v10 = vld [vmem:[%s706_s3 + $0x18] sm:$0xff]   ;;  %v514_v11 = vld [vmem:[%s705_s1 + $0x30] sm:$0xff]   ;;  %v520_v12 = vld [vmem:[%s706_s3 + $0x20] sm:$0xff]  }
   0x5   :  { %v515_v13 = vld [vmem:[%s705_s1 + $0x38] sm:$0xff]   ;;  %v27_v14 = vld [vmem:[%s707_s0] sm:$0xff]  ;;  %v28_v15 = vld [vmem:[%s707_s0 + $0x8] sm:$0xff] }
   0x6   :  { %v521_v16 = vld [vmem:[%s706_s3 + $0x28] sm:$0xff]   ;;  %v29_v17 = vpack.c.bf16 %v28_v15, %v27_v14  ;;  %v522_v18 = vld [vmem:[%s706_s3 + $0x30] sm:$0xff]   ;;  %v523_v19 = vld [vmem:[%s706_s3 + $0x38] sm:$0xff]  }
   0x7   :  { %449 = vmatpush3.bf16.msra.mxu0 %v509_v2  ;;  %469 = vmatpush3.bf16.msra.mxu1 %v517_v6  ;;  %v524_v20 = vld [vmem:[%s708_s5] sm:$0xff]   ;;  %v525_v21 = vld [vmem:[%s708_s5 + $0x8] sm:$0xff]   ;;  %v526_v22 = vld [vmem:[%s708_s5 + $0x10] sm:$0xff]  }
   0x8   :  { %450 = vmatprep.subr.bf16.mxu0 %v540_v0  ;;  %470 = vmatprep.subr.bf16.mxu1 %v540_v0  ;;  %v527_v23 = vld [vmem:[%s708_s5 + $0x18] sm:$0xff]   ;;  %v528_v24 = vld [vmem:[%s708_s5 + $0x20] sm:$0xff]   ;;  %v529_v25 = vld [vmem:[%s708_s5 + $0x28] sm:$0xff]  }
   0x9   :  { %v390_v26 = vld [vmem:[%s709_s2] ss:$0 sm:$0xff]  ;;  %v530_v36 = vld [vmem:[%s708_s5 + $0x30] sm:$0xff]   ;;  %v531_v37 = vld [vmem:[%s708_s5 + $0x38] sm:$0xff]  }
   0xa   :  { %v399_v38 = vld [vmem:[%s710_s4] ss:$0 sm:$0xff] }
   0xb   :  { %451 = vmatpush3.bf16.msra.mxu0 %v510_v3  ;;  %471 = vmatpush3.bf16.msra.mxu1 %v518_v8  ;;  %v408_v48 = vld [vmem:[%s711_s6] ss:$0 sm:$0xff] }
   0xc   :  { %452 = vmatprep.subr.bf16.mxu0 %v540_v0  ;;  %472 = vmatprep.subr.bf16.mxu1 %v540_v0 }
   0xf   :  { %453 = vmatpush3.bf16.msra.mxu0 %v511_v5  ;;  %473 = vmatpush3.bf16.msra.mxu1 %v519_v10 }
  0x10   :  { %454 = vmatprep.subr.bf16.mxu0 %v540_v0  ;;  %474 = vmatprep.subr.bf16.mxu1 %v540_v0 }
  0x13   :  { %455 = vmatpush3.bf16.msra.mxu0 %v512_v7  ;;  %475 = vmatpush3.bf16.msra.mxu1 %v520_v12 }
  0x14   :  { %456 = vmatprep.subr.bf16.mxu0 %v540_v0  ;;  %476 = vmatprep.subr.bf16.mxu1 %v540_v0 }
  0x17   :  { %457 = vmatpush3.bf16.msra.mxu0 %v513_v9  ;;  %477 = vmatpush3.bf16.msra.mxu1 %v521_v16 }
  0x18   :  { %458 = vmatprep.subr.bf16.mxu0 %v540_v0  ;;  %478 = vmatprep.subr.bf16.mxu1 %v540_v0 }
  0x1b   :  { %459 = vmatpush3.bf16.msra.mxu0 %v514_v11  ;;  %479 = vmatpush3.bf16.msra.mxu1 %v522_v18 }
  0x1c   :  { %460 = vmatprep.subr.bf16.mxu0 %v540_v0  ;;  %480 = vmatprep.subr.bf16.mxu1 %v540_v0 }
  0x1f   :  { %461 = vmatpush3.bf16.msra.mxu0 %v515_v13  ;;  %481 = vmatpush3.bf16.msra.mxu1 %v523_v19 }
  0x20   :  { %486 = vmatprep.subr.bf16.mxu0 %v540_v0 }
  0x22   :  { %463 = vmatmul.mubr.bf16.vlgmr.msra.gmra.mrb[0].mxu0 %v29_v17 }
  0x23   :  { %502 = vmatprep.mubr.msk.bf16.mxu0 %vm541_vm0, %v540_v0  ;;  %487 = vmatpush3.bf16.msra.mxu0 %v524_v20 }
  0x24   :  { %488 = vmatprep.subr.bf16.mxu0 %v540_v0 }
  0x27   :  { %489 = vmatpush3.bf16.msra.mxu0 %v525_v21 }
  0x28   :  { %490 = vmatprep.subr.bf16.mxu0 %v540_v0 }
  0x2b   :  { %491 = vmatpush3.bf16.msra.mxu0 %v526_v22 }
  0x2c   :  { %492 = vmatprep.subr.bf16.mxu0 %v540_v0 }
  0x2f   :  { %493 = vmatpush3.bf16.msra.mxu0 %v527_v23 }
  0x30   :  { %494 = vmatprep.subr.bf16.mxu0 %v540_v0 }
  0x33   :  { %495 = vmatpush3.bf16.msra.mxu0 %v528_v24 }
  0x34   :  { %496 = vmatprep.subr.bf16.mxu0 %v540_v0 }
  0x37   :  { %497 = vmatpush3.bf16.msra.mxu0 %v529_v25 }
  0x38   :  { %498 = vmatprep.subr.bf16.mxu0 %v540_v0 }
  0x3b   :  { %499 = vmatpush3.bf16.msra.mxu0 %v530_v36 }
  0x3c   :  { %500 = vmatprep.subr.bf16.mxu0 %v540_v0 }
  0x3f   :  { %501 = vmatpush3.bf16.msra.mxu0 %v531_v37 }
  0xf5   :  { %v135_v27 = vpop.f32.mrb[0].mxu0 }
  0xf6   :  { %v136_v28 = vadd.f32 %v390_v26, %v135_v27  ;;  %v464_v29 = vpop.f32.mrb[1].mxu0 }
  0xf7   :  { %v138_v30 = vpop.f32.mrb[2].mxu0 }
  0xf8   :  { %v139_v31 = vadd.f32 %v390_v26, %v138_v30  ;;  %v465_v32 = vpop.f32.mrb[3].mxu0  ;;  %v142_v33 = vmax.f32 %v136_v28, 0.0 }
  0xfa   :  { %v143_v34 = vmax.f32 %v139_v31, 0.0 }
  0xfc   :  { %v144_v35 = vpack.c.bf16 %v143_v34, %v142_v33 }
  0xfe   :  { %483 = vmatmul.mubr.bf16.vlgmr.msra.gmra.mrb[0].mxu1 %v144_v35 }
 0x1d1   :  { %v250_v39 = vpop.f32.mrb[0].mxu1 }
 0x1d2   :  { %v251_v40 = vadd.f32 %v399_v38, %v250_v39  ;;  %v484_v41 = vpop.f32.mrb[1].mxu1 }
 0x1d3   :  { %v253_v42 = vpop.f32.mrb[2].mxu1 }
 0x1d4   :  { %v254_v43 = vadd.f32 %v399_v38, %v253_v42  ;;  %v485_v44 = vpop.f32.mrb[3].mxu1  ;;  %v257_v45 = vmax.f32 %v251_v40, 0.0 }
 0x1d6   :  { %v258_v46 = vmax.f32 %v254_v43, 0.0 }
 0x1d8   :  { %v259_v47 = vpack.c.bf16 %v258_v46, %v257_v45 }
 0x1da   :  { %503 = vmatmul.mubr.bf16.vlgmr.msra.gmra.mrb[4].mxu0 %v259_v47 }
 0x2ad   :  { %v365_v49 = vpop.f32.mrb[4].mxu0 }
 0x2ae   :  { %v366_v50 = vadd.f32 %v408_v48, %v365_v49  ;;  %v504_v51 = vpop.f32.mrb[5].mxu0 }
 0x2af   :  { %v368_v52 = vpop.f32.mrb[6].mxu0 }
 0x2b0   :  { %v417_v53 = vmul.f32 -1.442695, %v366_v50  ;;  %v369_v54 = vadd.f32 %v408_v48, %v368_v52  ;;  %v505_v55 = vpop.f32.mrb[7].mxu0 }
 0x2b2   :  { %532 = vpow2.f32 %v417_v53  ;;  %v418_v56 = vmul.f32 -1.442695, %v369_v54 }
 0x2b4   :  { %534 = vpow2.f32 %v418_v56 }
 0x2bc   :  { %v533_v57 = vpop.eup %532 }
 0x2bd   :  { %v378_v58 = vadd.f32 1.0, %v533_v57 }
 0x2be   :  { %v535_v59 = vpop.eup %534 }
 0x2bf   :  { %536 = vrcp.f32 %v378_v58  ;;  %v379_v60 = vadd.f32 1.0, %v535_v59 }
 0x2c1   :  { %538 = vrcp.f32 %v379_v60 }
 0x2c9   :  { %v537_v61 = vpop.eup %536 }
 0x2ca   :  { %384 = vst [vmem:[%s712_s7] sm:$0xff] %v537_v61 }
 0x2cb   :  { %v539_v62 = vpop.eup %538 }
 0x2cc   :  { %385 = vst [vmem:[%s712_s7 + $0x8] sm:$0xff] %v539_v62 }

</bundles_post_ra>
